<compile_context>
chip_gen: v7x
topology: tpu7x:2x2x1
jax: 0.10.0
libtpu: 0.0.40
codegen_flags: <defaults>
</compile_context>

<pallas_src>
import jax
import jax.numpy as jnp
from jax import lax
from jax.experimental import pallas as pl
from jax.experimental.pallas import tpu as pltpu

LANES = 128
SUBLANES = 8
CHUNK_ROWS = 256                      # rows per inner fori_loop iteration
TARGET_TILE_BYTES = 2 * 1024 * 1024   # HBM bytes per input per grid step


def _round_up(x, m):
    return ((x + m - 1) // m) * m


def _make_kernel(tile_rows, chunk_rows, steps_per_split, rows_total,
                 full_tiles, needs_mask):
    n_chunks = tile_rows // chunk_rows

    def kernel(yhat_ref, y_ref, out_ref, acc_ref):
        k = pl.program_id(1)
        t = pl.program_id(0) * steps_per_split + k    # linear tile index

        @pl.when(k == 0)
        def _init():
            acc_ref[...] = jnp.zeros_like(acc_ref)

        def accumulate(masked):
            def chunk_body(ci, carry):
                s_dsq, s_ysq, s_dab, s_yab = carry
                r0 = pl.multiple_of(ci * chunk_rows, chunk_rows)
                yh = yhat_ref[pl.ds(r0, chunk_rows), :].astype(jnp.float32)
                yy = y_ref[pl.ds(r0, chunk_rows), :].astype(jnp.float32)
                if masked:
                    # Zero BOTH operands past the true end of the stream so
                    # all four partial sums stay exact on the tail tile(s).
                    rid = (t * tile_rows + ci * chunk_rows
                           + lax.broadcasted_iota(jnp.int32,
                                                  (chunk_rows, LANES), 0))
                    valid = rid < rows_total
                    zero = jnp.zeros((), jnp.float32)
                    yh = jnp.where(valid, yh, zero)
                    yy = jnp.where(valid, yy, zero)
                d = yh - yy

                def fold(x):
                    # Sublane-grouped in-chunk reduction: pure VALU adds.
                    return x.reshape(chunk_rows // SUBLANES, SUBLANES,
                                     LANES).sum(axis=0)

                return (s_dsq + fold(d * d),
                        s_ysq + fold(yy * yy),
                        s_dab + fold(jnp.abs(d)),
                        s_yab + fold(jnp.abs(yy)))

            init = tuple(jnp.zeros((SUBLANES, LANES), jnp.float32)
                         for _ in range(4))
            s_dsq, s_ysq, s_dab, s_yab = lax.fori_loop(0, n_chunks,
                                                       chunk_body, init)
            acc_ref[0] += s_dsq          # sum (yhat - y)^2
            acc_ref[1] += s_ysq          # sum y^2
            acc_ref[2] += s_dab          # sum |yhat - y|
            acc_ref[3] += s_yab          # sum |y|

        if needs_mask:
            # Only the tile(s) holding the ragged tail pay for the mask.
            @pl.when(t < full_tiles)
            def _bulk():
                accumulate(masked=False)

            @pl.when(t >= full_tiles)
            def _tail():
                accumulate(masked=True)
        else:
            accumulate(masked=False)

        @pl.when(k == steps_per_split - 1)
        def _finalize():
            out_ref[...] = acc_ref[...]

    return kernel


def mix_l1_l2_loss(yhat, y, eps=1e-06, scalar=0.5):
    """JAX/Pallas equivalent of MixL1L2Loss.forward. Returns a scalar f32."""
    assert yhat.shape == y.shape, "yhat and y must have the same shape"
    del eps  # unused in the reference forward (kept for signature parity)

    n = yhat.size
    yh_flat = yhat.reshape(-1)
    y_flat = y.reshape(-1)

    # TODO(synk): the lane-ragged (n % 128 != 0) case still pays a host-side
    # pad copy; avoiding it needs a 1-D / manual-DMA input path. Zero padding
    # is exact for every partial sum, and the common case pays nothing.
    lane_pad = (-n) % LANES
    if lane_pad:
        yh_flat = jnp.pad(yh_flat, (0, lane_pad))
        y_flat = jnp.pad(y_flat, (0, lane_pad))

    rows = (n + lane_pad) // LANES
    yh2d = yh_flat.reshape(rows, LANES)
    y2d = y_flat.reshape(rows, LANES)

    # Tile sizing: keep HBM bytes per grid step ~constant across dtypes.
    itemsize = jnp.dtype(yhat.dtype).itemsize
    max_tile_rows = max(CHUNK_ROWS, TARGET_TILE_BYTES // (LANES * itemsize))

    if rows <= max_tile_rows:
        # Small input: single block. Pad rows (input is at most a few MiB
        # here, so this copy is negligible) so the (8,128) fold shape holds.
        chunk_rows = min(CHUNK_ROWS, _round_up(rows, SUBLANES))
        padded_rows = _round_up(rows, chunk_rows)
        if padded_rows != rows:
            yh2d = jnp.pad(yh2d, ((0, padded_rows - rows), (0, 0)))
            y2d = jnp.pad(y2d, ((0, padded_rows - rows), (0, 0)))
            rows = padded_rows
        tile_rows = rows
    else:
        chunk_rows = CHUNK_ROWS
        tile_rows = max_tile_rows    # multiple of CHUNK_ROWS by construction

    total_tiles = -(-rows // tile_rows)
    n_splits = 2 if total_tiles >= 2 else 1
    steps = -(-total_tiles // n_splits)
    full_tiles = rows // tile_rows
    needs_mask = (n_splits * steps * tile_rows) != rows

    kernel = _make_kernel(tile_rows, chunk_rows, steps, rows,
                          full_tiles, needs_mask)

    def in_map(c, k):
        # Clamp so an (all-padding) out-of-range tile still maps to an
        # in-bounds block; its contribution is masked to zero in-kernel.
        return (jnp.minimum(c * steps + k, total_tiles - 1), 0)

    partials = pl.pallas_call(
        kernel,
        out_shape=jax.ShapeDtypeStruct((n_splits, 4, SUBLANES, LANES),
                                       jnp.float32),
        grid_spec=pltpu.PrefetchScalarGridSpec(
            num_scalar_prefetch=0,
            grid=(n_splits, steps),
            in_specs=[
                pl.BlockSpec((tile_rows, LANES), in_map),
                pl.BlockSpec((tile_rows, LANES), in_map),
            ],
            out_specs=pl.BlockSpec((None, 4, SUBLANES, LANES),
                                   lambda c, k: (c, 0, 0, 0)),
            scratch_shapes=[pltpu.VMEM((4, SUBLANES, LANES), jnp.float32)],
        ),
        compiler_params=pltpu.CompilerParams(
            # TODO(synk): on v7x, swap the leading axis to pltpu.CORE_PARALLEL
            # to guarantee the stream is split across both TensorCores.
            dimension_semantics=("parallel", "arbitrary"),
            vmem_limit_bytes=32 * 1024 * 1024,
        ),
    )(yh2d, y2d)

    # Tiny host-side fold: (n_splits, 4, 8, 128) -> 4 scalars.
    sums = jnp.sum(partials, axis=(0, 2, 3))
    diff_sq, y_sq, diff_abs, y_abs = sums[0], sums[1], sums[2], sums[3]

    l2_term = jnp.sqrt(diff_sq) / jnp.sqrt(y_sq)
    l1_term = diff_abs / y_abs
    return scalar * l2_term + scalar * l1_term


def _reference(yhat, y, scalar=0.5):
    yh = yhat.astype(jnp.float32)
    yf = y.astype(jnp.float32)
    d = yh - yf
    l2 = jnp.sqrt(jnp.sum(d * d)) / jnp.sqrt(jnp.sum(yf * yf))
    l1 = jnp.sum(jnp.abs(d)) / jnp.sum(jnp.abs(yf))
    return scalar * l2 + scalar * l1


if __name__ == "__main__":
    key = jax.random.PRNGKey(0)
    k1, k2, k3, k4, k5, k6 = jax.random.split(key, 6)

    # Primary NCHW-shaped example (the loss is layout-agnostic: full reduce).
    shape = (2, 4, 16, 16)
    yhat = jax.random.normal(k1, shape, dtype=jnp.float32)
    y = jax.random.normal(k2, shape, dtype=jnp.float32)
    loss = jax.block_until_ready(mix_l1_l2_loss(yhat, y))
    ref = _reference(yhat, y)
    assert jnp.allclose(loss, ref, rtol=1e-5, atol=1e-6), (loss, ref)

    # Row count not a sublane multiple (exercises the small-case row pad).
    yhat2 = jax.random.normal(k3, (5, 512), dtype=jnp.float32)
    y2 = jax.random.normal(k4, (5, 512), dtype=jnp.float32)
    loss2 = jax.block_until_ready(mix_l1_l2_loss(yhat2, y2))
    assert jnp.allclose(loss2, _reference(yhat2, y2), rtol=1e-5, atol=1e-6)

    # Lane-ragged element count in bf16 (pad fallback + in-kernel upcast).
    yhat3 = jax.random.normal(k5, (3, 50), dtype=jnp.bfloat16)
    y3 = jax.random.normal(k6, (3, 50), dtype=jnp.bfloat16)
    loss3 = jax.block_until_ready(mix_l1_l2_loss(yhat3, y3))
    assert jnp.allclose(loss3, _reference(yhat3, y3), rtol=1e-4, atol=1e-5)

    print("KERNEL_OK")
</pallas_src>

<mosaic_0001>
module attributes {stable_mosaic.version = 11 : i64} {
  func.func @kernel(%arg0: i32, %arg1: i32, %arg2: memref<16x128xf32, #tpu.memory_space<vmem>>, %arg3: memref<16x128xf32, #tpu.memory_space<vmem>>, %arg4: memref<1x4x8x128xf32, #tpu.memory_space<vmem>>, %arg5: memref<4x8x128xf32, #tpu.memory_space<vmem>>) attributes {dimension_semantics = [#tpu.dimension_semantics<parallel>, #tpu.dimension_semantics<arbitrary>], iteration_bounds = array<i64: 1, 1>, scalar_prefetch = 0 : i64, scratch_operands = 1 : i64, tpu.core_type = #tpu.core_type<tc>, window_params = [{transform_indices = @transform_0, window_bounds = array<i64: 16, 128>}, {transform_indices = @transform_1, window_bounds = array<i64: 16, 128>}, {transform_indices = @transform_2, window_bounds = array<i64: 1, 4, 8, 128>}]} {
    %c0_i32 = arith.constant 0 : i32
    %0 = arith.cmpi eq, %arg1, %c0_i32 : i32
    %1 = arith.extui %0 : i1 to i32
    %c0_i32_0 = arith.constant 0 : i32
    %2 = arith.cmpi ne, %1, %c0_i32_0 : i32
    scf.if %2 {
      %cst_33 = arith.constant 0.000000e+00 : f32
      %57 = vector.broadcast %cst_33 : f32 to vector<4x8x128xf32>
      %c0_34 = arith.constant 0 : index
      %c0_35 = arith.constant 0 : index
      %c0_36 = arith.constant 0 : index
      %58 = vector.load %arg5[%c0_34, %c0_35, %c0_36] : memref<4x8x128xf32, #tpu.memory_space<vmem>>, vector<4x8x128xf32>
      tpu.vector_store %arg5[%c0_34, %c0_35, %c0_36], %57 {strides = array<i32>} : memref<4x8x128xf32, #tpu.memory_space<vmem>>, vector<4x8x128xf32>,
    } else {
    }
    %cst = arith.constant 0.000000e+00 : f32
    %3 = vector.broadcast %cst : f32 to vector<8x128xf32>
    %cst_1 = arith.constant 0.000000e+00 : f32
    %4 = vector.broadcast %cst_1 : f32 to vector<8x128xf32>
    %cst_2 = arith.constant 0.000000e+00 : f32
    %5 = vector.broadcast %cst_2 : f32 to vector<8x128xf32>
    %cst_3 = arith.constant 0.000000e+00 : f32
    %6 = vector.broadcast %cst_3 : f32 to vector<8x128xf32>
    %c0_i32_4 = arith.constant 0 : i32
    %c16_i32 = arith.constant 16 : i32
    %7 = arith.muli %c0_i32_4, %c16_i32 : i32
    %8 = tpu.assume_multiple %7, 16 : i32
    %9 = arith.index_cast %8 : i32 to index
    %c0 = arith.constant 0 : index
    %10 = vector.load %arg2[%9, %c0] : memref<16x128xf32, #tpu.memory_space<vmem>>, vector<16x128xf32>
    %11 = arith.index_cast %8 : i32 to index
    %c0_5 = arith.constant 0 : index
    %12 = vector.load %arg3[%11, %c0_5] : memref<16x128xf32, #tpu.memory_space<vmem>>, vector<16x128xf32>
    %13 = arith.subf %10, %12 : vector<16x128xf32>
    %14 = arith.mulf %13, %13 : vector<16x128xf32>
    %15 = vector.shape_cast %14 : vector<16x128xf32> to vector<2x8x128xf32>
    %cst_6 = arith.constant dense<0.000000e+00> : vector<8x128xf32>
    %16 = vector.multi_reduction <add>, %15, %cst_6 [0] : vector<2x8x128xf32> to vector<8x128xf32>
    %17 = arith.addf %3, %16 : vector<8x128xf32>
    %18 = arith.mulf %12, %12 : vector<16x128xf32>
    %19 = vector.shape_cast %18 : vector<16x128xf32> to vector<2x8x128xf32>
    %cst_7 = arith.constant dense<0.000000e+00> : vector<8x128xf32>
    %20 = vector.multi_reduction <add>, %19, %cst_7 [0] : vector<2x8x128xf32> to vector<8x128xf32>
    %21 = arith.addf %4, %20 : vector<8x128xf32>
    %22 = math.absf %13 : vector<16x128xf32>
    %23 = vector.shape_cast %22 : vector<16x128xf32> to vector<2x8x128xf32>
    %cst_8 = arith.constant dense<0.000000e+00> : vector<8x128xf32>
    %24 = vector.multi_reduction <add>, %23, %cst_8 [0] : vector<2x8x128xf32> to vector<8x128xf32>
    %25 = arith.addf %5, %24 : vector<8x128xf32>
    %26 = math.absf %12 : vector<16x128xf32>
    %27 = vector.shape_cast %26 : vector<16x128xf32> to vector<2x8x128xf32>
    %cst_9 = arith.constant dense<0.000000e+00> : vector<8x128xf32>
    %28 = vector.multi_reduction <add>, %27, %cst_9 [0] : vector<2x8x128xf32> to vector<8x128xf32>
    %29 = arith.addf %6, %28 : vector<8x128xf32>
    %c1_i32 = arith.constant 1 : i32
    %c0_10 = arith.constant 0 : index
    %c0_11 = arith.constant 0 : index
    %c0_12 = arith.constant 0 : index
    %30 = vector.load %arg5[%c0_10, %c0_11, %c0_12] : memref<4x8x128xf32, #tpu.memory_space<vmem>>, vector<1x8x128xf32>
    %31 = vector.shape_cast %30 : vector<1x8x128xf32> to vector<8x128xf32>
    %32 = arith.addf %31, %17 : vector<8x128xf32>
    %c0_13 = arith.constant 0 : index
    %c0_14 = arith.constant 0 : index
    %c0_15 = arith.constant 0 : index
    %33 = vector.load %arg5[%c0_13, %c0_14, %c0_15] : memref<4x8x128xf32, #tpu.memory_space<vmem>>, vector<1x8x128xf32>
    %34 = vector.shape_cast %33 : vector<1x8x128xf32> to vector<8x128xf32>
    %35 = vector.shape_cast %32 : vector<8x128xf32> to vector<1x8x128xf32>
    tpu.vector_store %arg5[%c0_13, %c0_14, %c0_15], %35 {strides = array<i32>} : memref<4x8x128xf32, #tpu.memory_space<vmem>>, vector<1x8x128xf32>,
    %c1 = arith.constant 1 : index
    %c0_16 = arith.constant 0 : index
    %c0_17 = arith.constant 0 : index
    %36 = vector.load %arg5[%c1, %c0_16, %c0_17] : memref<4x8x128xf32, #tpu.memory_space<vmem>>, vector<1x8x128xf32>
    %37 = vector.shape_cast %36 : vector<1x8x128xf32> to vector<8x128xf32>
    %38 = arith.addf %37, %21 : vector<8x128xf32>
    %c1_18 = arith.constant 1 : index
    %c0_19 = arith.constant 0 : index
    %c0_20 = arith.constant 0 : index
    %39 = vector.load %arg5[%c1_18, %c0_19, %c0_20] : memref<4x8x128xf32, #tpu.memory_space<vmem>>, vector<1x8x128xf32>
    %40 = vector.shape_cast %39 : vector<1x8x128xf32> to vector<8x128xf32>
    %41 = vector.shape_cast %38 : vector<8x128xf32> to vector<1x8x128xf32>
    tpu.vector_store %arg5[%c1_18, %c0_19, %c0_20], %41 {strides = array<i32>} : memref<4x8x128xf32, #tpu.memory_space<vmem>>, vector<1x8x128xf32>,
    %c2 = arith.constant 2 : index
    %c0_21 = arith.constant 0 : index
    %c0_22 = arith.constant 0 : index
    %42 = vector.load %arg5[%c2, %c0_21, %c0_22] : memref<4x8x128xf32, #tpu.memory_space<vmem>>, vector<1x8x128xf32>
    %43 = vector.shape_cast %42 : vector<1x8x128xf32> to vector<8x128xf32>
    %44 = arith.addf %43, %25 : vector<8x128xf32>
    %c2_23 = arith.constant 2 : index
    %c0_24 = arith.constant 0 : index
    %c0_25 = arith.constant 0 : index
    %45 = vector.load %arg5[%c2_23, %c0_24, %c0_25] : memref<4x8x128xf32, #tpu.memory_space<vmem>>, vector<1x8x128xf32>
    %46 = vector.shape_cast %45 : vector<1x8x128xf32> to vector<8x128xf32>
    %47 = vector.shape_cast %44 : vector<8x128xf32> to vector<1x8x128xf32>
    tpu.vector_store %arg5[%c2_23, %c0_24, %c0_25], %47 {strides = array<i32>} : memref<4x8x128xf32, #tpu.memory_space<vmem>>, vector<1x8x128xf32>,
    %c3 = arith.constant 3 : index
    %c0_26 = arith.constant 0 : index
    %c0_27 = arith.constant 0 : index
    %48 = vector.load %arg5[%c3, %c0_26, %c0_27] : memref<4x8x128xf32, #tpu.memory_space<vmem>>, vector<1x8x128xf32>
    %49 = vector.shape_cast %48 : vector<1x8x128xf32> to vector<8x128xf32>
    %50 = arith.addf %49, %29 : vector<8x128xf32>
    %c3_28 = arith.constant 3 : index
    %c0_29 = arith.constant 0 : index
    %c0_30 = arith.constant 0 : index
    %51 = vector.load %arg5[%c3_28, %c0_29, %c0_30] : memref<4x8x128xf32, #tpu.memory_space<vmem>>, vector<1x8x128xf32>
    %52 = vector.shape_cast %51 : vector<1x8x128xf32> to vector<8x128xf32>
    %53 = vector.shape_cast %50 : vector<8x128xf32> to vector<1x8x128xf32>
    tpu.vector_store %arg5[%c3_28, %c0_29, %c0_30], %53 {strides = array<i32>} : memref<4x8x128xf32, #tpu.memory_space<vmem>>, vector<1x8x128xf32>,
    %c0_i32_31 = arith.constant 0 : i32
    %54 = arith.cmpi eq, %arg1, %c0_i32_31 : i32
    %55 = arith.extui %54 : i1 to i32
    %c0_i32_32 = arith.constant 0 : i32
    %56 = arith.cmpi ne, %55, %c0_i32_32 : i32
    scf.if %56 {
      %c0_33 = arith.constant 0 : index
      %c0_34 = arith.constant 0 : index
      %c0_35 = arith.constant 0 : index
      %57 = vector.load %arg5[%c0_33, %c0_34, %c0_35] : memref<4x8x128xf32, #tpu.memory_space<vmem>>, vector<4x8x128xf32>
      %c0_36 = arith.constant 0 : index
      %c0_37 = arith.constant 0 : index
      %c0_38 = arith.constant 0 : index
      %c0_39 = arith.constant 0 : index
      %58 = vector.load %arg4[%c0_36, %c0_37, %c0_38, %c0_39] : memref<1x4x8x128xf32, #tpu.memory_space<vmem>>, vector<1x4x8x128xf32>
      %59 = vector.shape_cast %58 : vector<1x4x8x128xf32> to vector<4x8x128xf32>
      %60 = vector.shape_cast %57 : vector<4x8x128xf32> to vector<1x4x8x128xf32>
      tpu.vector_store %arg4[%c0_36, %c0_37, %c0_38, %c0_39], %60 {strides = array<i32>} : memref<1x4x8x128xf32, #tpu.memory_space<vmem>>, vector<1x4x8x128xf32>,
    } else {
    }
    return
  }
  func.func @transform_0(%arg0: i32, %arg1: i32) -> (i32, i32) {
    %c1_i32 = arith.constant 1 : i32
    %0 = arith.muli %arg0, %c1_i32 : i32
    %1 = arith.addi %0, %arg1 : i32
    %c0_i32 = arith.constant 0 : i32
    %2 = arith.minsi %1, %c0_i32 : i32
    %c0_i32_0 = arith.constant 0 : i32
    %c0_i32_1 = arith.constant 0 : i32
    return %2, %c0_i32_0 : i32, i32
  }
  func.func @transform_1(%arg0: i32, %arg1: i32) -> (i32, i32) {
    %c1_i32 = arith.constant 1 : i32
    %0 = arith.muli %arg0, %c1_i32 : i32
    %1 = arith.addi %0, %arg1 : i32
    %c0_i32 = arith.constant 0 : i32
    %2 = arith.minsi %1, %c0_i32 : i32
    %c0_i32_0 = arith.constant 0 : i32
    %c0_i32_1 = arith.constant 0 : i32
    return %2, %c0_i32_0 : i32, i32
  }
  func.func @transform_2(%arg0: i32, %arg1: i32) -> (i32, i32, i32, i32) {
    %c0_i32 = arith.constant 0 : i32
    %c0_i32_0 = arith.constant 0 : i32
    %c0_i32_1 = arith.constant 0 : i32
    %c0_i32_2 = arith.constant 0 : i32
    return %arg0, %c0_i32, %c0_i32_0, %c0_i32_1 : i32, i32, i32, i32
  }
}

</mosaic_0001>

<bundles_post_ra>
// kernel: tpu_custom_call.1
= control target key start
LH: loop header
LB: loop body
LE: loop exit
PB: predicated region body
PF: predicated region fallthrough
CT: control target
= control target key end

     0   :  { %7 = vsyncpa [#allocation4], 0  ;;  %s280_s0 = inlined_call_operand.hbm [shape: f32[16,128], index: 0, kind: input, shape index: {}]   ;;  %s281_s1 = inlined_call_operand.hbm [shape: f32[16,128], index: 1, kind: input, shape index: {}]   ;;  %s282_s2 = inlined_call_operand.hbm [shape: f32[1,4,8,128], index: 2, kind: output, shape index: {}]  }
   0x1   :  { %8 = vsyncpa [#allocation7], 0 }
   0x2   :  { %9 = vsyncpa [#allocation5], 0  ;;  %s215_s9 = smov [#allocation3]   ;;  %s143_s13 = scalar_lea.hbm %s280_s0, 256 }
   0x3   :  { %s21_s10 = sshll.u32 %s215_s9, 4  ;;  %p144_p0 = scmp.ne.s32.totalorder %s280_s0, %s143_s13  ;;  %s22_s10 = int_to_ptr.vmem [resolvable:$true] %s21_s10 }
   0x4   :  { %p147_p1 = scmp.lt.u32.totalorder %s143_s13, %s280_s0 }
   0x6   :  { %p149_p2 = pnand %p147_p1, %p144_p0 }
   0x8   :  { %152 = shalt.err (!%p149_p2)
}
   0x9   :  { %s153_s18 = scalar_lea.vmem %s22_s10, 256  ;;  %p158_p4 = scmp.lt.s32.totalorder %s22_s10, %s22_s10 }
   0xa   :  { %p154_p3 = scmp.ne.s32.totalorder %s22_s10, %s153_s18  ;;  %p159_p5 = scmp.lt.s32.totalorder %s153_s18, %s153_s18 }
   0xc   :  { %p160_p6 = por %p159_p5, %p158_p4 }
   0xe   :  { %p161_p7 = pnand %p160_p6, %p154_p3 }
  0x10   :  { %164 = shalt.err (!%p161_p7)
}
  0x11   :  { %s216_s19 = smov 128   ;;  %s217_s20 = smov 8  }
  0x12   :  { %27 = dma.hbm_to_vmem [thread:$0]  %s280_s0, 256, %s22_s10, [#allocation4], %s216_s19, %s216_s19, %s217_s20  }
  0x13   :  { %s218_s23 = smov [#allocation6]   ;;  %s165_s27 = scalar_lea.hbm %s281_s1, 256 }
  0x14   :  { %s39_s24 = sshll.u32 %s218_s23, 4  ;;  %p166_p8 = scmp.ne.s32.totalorder %s281_s1, %s165_s27  ;;  %s40_s24 = int_to_ptr.vmem [resolvable:$true] %s39_s24 }
  0x15   :  { %p169_p9 = scmp.lt.u32.totalorder %s165_s27, %s281_s1 }
  0x17   :  { %p171_p10 = pnand %p169_p9, %p166_p8 }
  0x19   :  { %174 = shalt.err (!%p171_p10)
}
  0x1a   :  { %s175_s4 = scalar_lea.vmem %s40_s24, 256  ;;  %p180_p12 = scmp.lt.s32.totalorder %s40_s24, %s40_s24 }
  0x1b   :  { %p176_p11 = scmp.ne.s32.totalorder %s40_s24, %s175_s4  ;;  %p181_p13 = scmp.lt.s32.totalorder %s175_s4, %s175_s4 }
  0x1d   :  { %p182_p0 = por %p181_p13, %p180_p12 }
  0x1f   :  { %p183_p1 = pnand %p182_p0, %p176_p11 }
  0x21   :  { %186 = shalt.err (!%p183_p1)
}
  0x22   :  { %45 = dma.hbm_to_vmem [thread:$0]  %s281_s1, 256, %s40_s24, [#allocation7], %s216_s19, %s216_s19, %s217_s20  }
  0x23   :  { %209 = dma.done.wait [#allocation4], 256  }
  0x24   :  { %210 = vsyncadd [#allocation4], 4294967040 }
  0x25   :  { %211 = dma.done.wait [#allocation7], 256  }
  0x26   :  { %212 = vsyncadd [#allocation7], 4294967040  ;;  %v68_v0 = vld [vmem:[#allocation3] sm:$0xff]  ;;  %v69_v1 = vld [vmem:[#allocation3 + $0x8] sm:$0xff]  ;;  %s219_s6 = smov [#allocation8]  }
  0x27   :  { %v70_v2 = vld [vmem:[#allocation6] sm:$0xff]  ;;  %v71_v3 = vld [vmem:[#allocation6 + $0x8] sm:$0xff]  ;;  %s121_s7 = sshll.u32 %s219_s6, 4  ;;  %s122_s7 = int_to_ptr.vmem [resolvable:$true] %s121_s7 }
  0x28   :  { %v72_v4 = vsub.f32 %v68_v0, %v70_v2  ;;  %v78_v5 = vmul.f32 %v70_v2, %v70_v2  ;;  %v86_v6 = vand.u32 2147483647, %v70_v2  ;;  %v73_v7 = vsub.f32 %v69_v1, %v71_v3  ;;  %s187_s1 = scalar_lea.vmem %s122_s7, 512  ;;  %p192_p3 = scmp.lt.s32.totalorder %s122_s7, %s122_s7 }
  0x29   :  { %v79_v8 = vmul.f32 %v71_v3, %v71_v3  ;;  %v87_v9 = vand.u32 2147483647, %v71_v3  ;;  %p188_p2 = scmp.ne.s32.totalorder %s122_s7, %s187_s1  ;;  %p193_p4 = scmp.lt.s32.totalorder %s187_s1, %s187_s1 }
  0x2a   :  { %v74_v10 = vmul.f32 %v72_v4, %v72_v4  ;;  %v82_v11 = vand.u32 2147483647, %v72_v4  ;;  %v75_v12 = vmul.f32 %v73_v7, %v73_v7  ;;  %v83_v14 = vand.u32 2147483647, %v73_v7 }
  0x2b   :  { %v80_v13 = vadd.f32 %v79_v8, %v78_v5  ;;  %v88_v15 = vadd.f32 %v87_v9, %v86_v6  ;;  %p194_p5 = por %p193_p4, %p192_p3 }
  0x2c   :  { %v76_v16 = vadd.f32 %v75_v12, %v74_v10  ;;  %v84_v17 = vadd.f32 %v83_v14, %v82_v11 }
  0x2d   :  { %113 = vst [vmem:[#allocation8 + $0x8] sm:$0xff] %v80_v13  ;;  %115 = vst [vmem:[#allocation8 + $0x18] sm:$0xff] %v88_v15  ;;  %p195_p6 = pnand %p194_p5, %p188_p2 }
  0x2e   :  { %112 = vst [vmem:[#allocation8] sm:$0xff] %v76_v16  ;;  %114 = vst [vmem:[#allocation8 + $0x10] sm:$0xff] %v84_v17 }
  0x2f   :  { %198 = shalt.err (!%p195_p6)
}
  0x30   :  { %s199_s10 = scalar_lea.hbm %s282_s2, 512 }
  0x31   :  { %p200_p7 = scmp.ne.s32.totalorder %s282_s2, %s199_s10  ;;  %p203_p8 = scmp.lt.u32.totalorder %s199_s10, %s282_s2 }
  0x33   :  { %p205_p9 = pnand %p203_p8, %p200_p7 }
  0x35   :  { %208 = shalt.err (!%p205_p9)
}
  0x36   :  { %127 = dma.vmem_to_hbm [thread:$0]  %s122_s7, 512, %s282_s2, [#allocation5], %s216_s19, %s216_s19, %s217_s20  }
  0x37   :  { %213 = dma.done.wait [#allocation5], 512  }
  0x38   :  { %214 = vsyncadd [#allocation5], 4294966784 }
  0x39   :  { %131 = vsyncpa [#allocation4], 1 }
  0x3a   :  { %132 = vsyncpa [#allocation7], 1 }
  0x3b   :  { %133 = vsyncpa [#allocation5], 1 }

</bundles_post_ra>
